<compile_context>
chip_gen: v7x
topology: tpu7x:2x2x1
jax: 0.10.0
libtpu: 0.0.40
codegen_flags: <defaults>
</compile_context>

<pallas_src>
import jax
import jax.numpy as jnp
from jax.experimental import pallas as pl
from jax.experimental.pallas import tpu as pltpu

BN_EPS = 1e-5                       # torch.nn.BatchNorm1d default eps
_VMEM_LIMIT = 32 * 1024 * 1024      # explicit scoped-VMEM budget (all gens)


# ---------------------------------------------------------------------------
# tile pickers (tail-safe: pad instead of monolithic fallback)
# ---------------------------------------------------------------------------
def _pick_tile_and_pad(n, *, target, align):
    """Return (tile, n_padded): tile <= target, tile % align == 0 (or tile == n
    when n <= target), and n_padded % tile == 0 (pad with zeros if needed)."""
    if n <= target:
        return n, n
    t = (target // align) * align
    tt = t
    while tt >= align:
        if n % tt == 0:
            return tt, n
        tt -= align
    n_pad = ((n + t - 1) // t) * t
    return t, n_pad


def _pick_col_tile(c, target=512):
    """Largest multiple-of-128 divisor of c that is <= target, else full c."""
    if c <= target or c % 128 != 0:
        return c
    t = (target // 128) * 128
    while t >= 128:
        if c % t == 0:
            return t
        t -= 128
    return c


# ---------------------------------------------------------------------------
# Kernel 1: fused projection x @ [W | Wz] (bf16 MXU, f32 acc) + exact streaming
#           BN statistics.  grid = (column tiles [parallel], row tiles
#           [arbitrary: stats accumulate across it]).
#   Outputs: y (N, 2H) bf16 and stats (2, 2H) f32 = [sum; sum_sq].
# ---------------------------------------------------------------------------
def _proj_stats_kernel(x_ref, w_ref, y_ref, stats_ref, acc_ref):
    i = pl.program_id(1)            # row-tile index (innermost, "arbitrary")
    nrow = pl.num_programs(1)

    @pl.when(i == 0)
    def _():
        acc_ref[...] = jnp.zeros_like(acc_ref)

    # bf16 operands, f32 accumulation on the MXU.
    y = jnp.dot(x_ref[...], w_ref[...], preferred_element_type=jnp.float32)
    y_ref[...] = y.astype(y_ref.dtype)                      # bf16 intermediate

    # Exact stats from the f32 MXU output (padded rows are all-zero => no-op).
    acc_ref[0:1, :] = acc_ref[0:1, :] + jnp.sum(y, axis=0, keepdims=True)
    acc_ref[1:2, :] = acc_ref[1:2, :] + jnp.sum(y * y, axis=0, keepdims=True)

    @pl.when(i == nrow - 1)
    def _():
        stats_ref[...] = acc_ref[...]


def proj_and_stats(x_flat, w_cat):
    """x_flat: (N, D) bf16, w_cat: (D, 2H) bf16 -> y (N, 2H) bf16, stats (2, 2H) f32."""
    n, d = x_flat.shape
    two_h = w_cat.shape[1]

    tile_n, n_pad = _pick_tile_and_pad(n, target=512, align=16)
    if n_pad != n:
        x_flat = jnp.pad(x_flat, ((0, n_pad - n), (0, 0)))
    tile_c = _pick_col_tile(two_h)

    grid = (two_h // tile_c, n_pad // tile_n)
    y, stats = pl.pallas_call(
        _proj_stats_kernel,
        out_shape=(jax.ShapeDtypeStruct((n_pad, two_h), jnp.bfloat16),
                   jax.ShapeDtypeStruct((2, two_h), jnp.float32)),
        grid=grid,
        in_specs=[
            pl.BlockSpec((tile_n, d), lambda c, i: (i, 0)),
            pl.BlockSpec((d, tile_c), lambda c, i: (0, c)),
        ],
        out_specs=(
            pl.BlockSpec((tile_n, tile_c), lambda c, i: (i, c)),
            pl.BlockSpec((2, tile_c), lambda c, i: (0, c)),   # resident per col
        ),
        scratch_shapes=[pltpu.VMEM((2, tile_c), jnp.float32)],
        # Row axis is "arbitrary" (stats accumulate across it); column tiles
        # are independent -> "parallel" (megacore sharding on v7x).
        compiler_params=pltpu.CompilerParams(
            dimension_semantics=("parallel", "arbitrary"),
            vmem_limit_bytes=_VMEM_LIMIT),
    )(x_flat, w_cat)
    if n_pad != n:
        y = y[:n]
    return y, stats


# ---------------------------------------------------------------------------
# Kernel 2: liBRU 'logprobs' recurrence with the BN apply fused in.
#   grid = (batch chunks [parallel], time blocks [arbitrary]).
#   NOTE: the time axis MUST be the innermost grid axis -- the hidden state is
#   carried across time blocks in a VMEM scratch and reset only at ti == 0.
#   Per step (BN applied on the 2-D slab, no 3-D normalized temporary):
#     pre = (wxz_t - mean) * inv_std + ht @ [V | Vz]      (bf16 MXU, f32 acc)
#     a   = pre[:, :H] ; zt = sigmoid(pre[:, H:])
#     exp(softplus(a)) == 1 + exp(a)
#     ht  = m + log(zt*exp(ht-m) + (1-zt)*(exp(-m) + exp(a-m))),
#           m = max(ht, a, 0)   (stable; identical to the original torch math)
# ---------------------------------------------------------------------------
def _libru_rec_kernel(stats_ref, wxz_ref, vvz_ref, o_ref, h_ref):
    ti = pl.program_id(1)

    @pl.when(ti == 0)
    def _():
        h_ref[...] = jnp.zeros_like(h_ref)

    bb, tt, two_h = wxz_ref.shape
    hdim = o_ref.shape[-1]

    stats = stats_ref[...]                                   # (2, 2H) f32
    mean_b = jnp.broadcast_to(stats[0:1, :], (bb, two_h))    # hoisted broadcasts
    inv_b = jnp.broadcast_to(stats[1:2, :], (bb, two_h))
    vvz = vvz_ref[...]                                       # (H, 2H) bf16, hoisted
    ht = h_ref[...]                                          # (bb, H) f32 carry

    # Short static inner loop over TT <= 16 time steps (fully unrolled).
    for s in range(tt):
        xt = (wxz_ref[:, s, :].astype(jnp.float32) - mean_b) * inv_b
        pre = xt + jnp.dot(ht.astype(jnp.bfloat16), vvz,
                           preferred_element_type=jnp.float32)
        a = pre[:, :hdim]                                    # W-path (softplus arg)
        zt = jax.nn.sigmoid(pre[:, hdim:])                   # Wz-path (gate)
        m = jnp.maximum(jnp.maximum(ht, a), 0.0)
        ht = m + jnp.log(zt * jnp.exp(ht - m)
                         + (1.0 - zt) * (jnp.exp(-m) + jnp.exp(a - m)))
        o_ref[:, s, :] = ht.astype(o_ref.dtype)

    h_ref[...] = ht


def libru_recurrence(y_bt2h, bn_stats, vvz, *, batch_chunks=1):
    """y_bt2h: (B, T, 2H) bf16 raw pre-activations; bn_stats: (2, 2H) f32
    [mean; inv_std]; vvz: (H, 2H) bf16."""
    b, t, two_h = y_bt2h.shape
    h = two_h // 2

    # Auto-adjust batch_chunks to a divisor of B (>=2 only pays off on v7x and
    # only when each chunk keeps >=128 rows for MXU M-dim efficiency).
    bc = max(d for d in range(1, min(batch_chunks, b) + 1) if b % d == 0)
    bb = b // bc

    tt, t_pad = _pick_tile_and_pad(t, target=16, align=8)
    if t_pad != t:
        y_bt2h = jnp.pad(y_bt2h, ((0, 0), (0, t_pad - t), (0, 0)))

    grid = (bc, t_pad // tt)
    out = pl.pallas_call(
        _libru_rec_kernel,
        out_shape=jax.ShapeDtypeStruct((b, t_pad, h), jnp.float32),
        grid=grid,
        in_specs=[
            pl.BlockSpec((2, two_h), lambda bi, ti: (0, 0)),
            pl.BlockSpec((bb, tt, two_h), lambda bi, ti: (bi, ti, 0)),
            pl.BlockSpec((h, two_h), lambda bi, ti: (0, 0)),
        ],
        out_specs=pl.BlockSpec((bb, tt, h), lambda bi, ti: (bi, ti, 0)),
        scratch_shapes=[pltpu.VMEM((bb, h), jnp.float32)],   # hidden-state carry
        compiler_params=pltpu.CompilerParams(
            dimension_semantics=("parallel", "arbitrary"),
            vmem_limit_bytes=_VMEM_LIMIT),
    )(bn_stats, y_bt2h, vvz)
    if t_pad != t:
        out = out[:, :t, :]
    return out


# ---------------------------------------------------------------------------
# Full forward (layer stacking = glue in plain JAX; no HBM transposes)
# ---------------------------------------------------------------------------
def libru_forward(x, params, *, batch_chunks=1):
    """x: (B, T, D) f32; params: list of (w_cat (D,2H) bf16, vvz (H,2H) bf16)."""
    for w_cat, vvz in params:
        b, t, d = x.shape
        two_h = w_cat.shape[1]
        n = b * t
        x_flat = x.reshape(n, d).astype(jnp.bfloat16)        # bf16 MXU operand
        y, stats = proj_and_stats(x_flat, w_cat)             # (N,2H) bf16, (2,2H) f32
        mean = stats[0] / n
        var = stats[1] / n - mean * mean                     # biased var (BN training)
        bn_stats = jnp.stack([mean, jax.lax.rsqrt(var + BN_EPS)], axis=0)
        y_bt2h = y.reshape(b, t, two_h)                      # free metadata reshape
        x = libru_recurrence(y_bt2h, bn_stats, vvz,
                             batch_chunks=batch_chunks)      # (B, T, H) f32
    return x


# ---------------------------------------------------------------------------
# Pure-JAX reference: naive torch math (separate W/Wz, naive BN, naive
# softplus/exp/log), but following the kernel's dtype policy (bf16 weights,
# bf16 matmul operands, bf16 pre-activation intermediate) so the comparison
# isolates the kernel logic rather than bf16 rounding.
# ---------------------------------------------------------------------------
def libru_reference(x, params):
    for w_cat, vvz in params:
        b, t, d = x.shape
        two_h = w_cat.shape[1]
        h = two_h // 2
        xf = x.reshape(b * t, d)

        y32 = jnp.dot(xf.astype(jnp.bfloat16), w_cat,
                      preferred_element_type=jnp.float32)    # (N, 2H) f32
        mean = y32.mean(0, keepdims=True)
        var = jnp.square(y32 - mean).mean(0, keepdims=True)
        y_b = y32.astype(jnp.bfloat16).astype(jnp.float32)   # bf16 intermediate
        ynorm = (y_b - mean) * jax.lax.rsqrt(var + BN_EPS)
        wx = ynorm[:, :h].reshape(b, t, h)
        wzx = ynorm[:, h:].reshape(b, t, h)

        ht = jnp.zeros((b, h), jnp.float32)
        hs = []
        for ti in range(t):
            rec = jnp.dot(ht.astype(jnp.bfloat16), vvz,
                          preferred_element_type=jnp.float32)
            zt = jax.nn.sigmoid(wzx[:, ti] + rec[:, h:])
            ct = jax.nn.softplus(wx[:, ti] + rec[:, :h])
            ht = jnp.log(zt * jnp.exp(ht) + (1.0 - zt) * jnp.exp(ct))
            hs.append(ht)
        x = jnp.stack(hs, axis=1)
    return x


# ---------------------------------------------------------------------------
# Deterministic parameter construction (shapes follow liBRU.__init__),
# pre-fused and stored bf16: w_cat = [W | Wz] (D, 2H), vvz = [V | Vz] (H, 2H).
# ---------------------------------------------------------------------------
def xavier_uniform(key, out_dim, in_dim):
    limit = (6.0 / (in_dim + out_dim)) ** 0.5
    w = jax.random.uniform(key, (out_dim, in_dim), jnp.float32, -limit, limit)
    return w.T  # store as (in, out)


def orthogonal(key, n):
    a = jax.random.normal(key, (n, n), jnp.float32)
    q, r = jnp.linalg.qr(a)
    q = q * jnp.sign(jnp.diagonal(r))[None, :]
    return q.T  # h @ V_w.T ; store transposed weight


def make_params(key, nb_inputs, layer_sizes):
    params = []
    d_in = nb_inputs
    for h in layer_sizes:
        key, kw, kwz, kv, kvz = jax.random.split(key, 5)
        w = xavier_uniform(kw, h, d_in)      # (d_in, h)
        wz = xavier_uniform(kwz, h, d_in)    # (d_in, h)
        v = orthogonal(kv, h)                # (h, h)
        vz = orthogonal(kvz, h)              # (h, h)
        w_cat = jnp.concatenate([w, wz], axis=1).astype(jnp.bfloat16)   # (d_in, 2h)
        vvz = jnp.concatenate([v, vz], axis=1).astype(jnp.bfloat16)     # (h, 2h)
        params.append((w_cat, vvz))
        d_in = h  # bidirectional=False
    return params


if __name__ == "__main__":
    B, T, NB_INPUTS = 2, 8, 16
    LAYER_SIZES = [32, 32]

    key = jax.random.PRNGKey(0)
    kx, kp = jax.random.split(key)
    x = jax.random.normal(kx, (B, T, NB_INPUTS), jnp.float32)
    params = make_params(kp, NB_INPUTS, LAYER_SIZES)

    out = jax.block_until_ready(libru_forward(x, params))
    ref = jax.block_until_ready(libru_reference(x, params))

    assert out.shape == (B, T, LAYER_SIZES[-1]), out.shape
    assert bool(jnp.all(jnp.isfinite(out)))
    assert bool(jnp.allclose(out, ref, rtol=1e-2, atol=1e-3)), float(
        jnp.max(jnp.abs(out - ref)))
    print("KERNEL_OK")
</pallas_src>

<mosaic_0001>
module attributes {stable_mosaic.version = 11 : i64} {
  func.func @_proj_stats_kernel(%arg0: i32, %arg1: i32, %arg2: memref<16x16xbf16, #tpu.memory_space<vmem>>, %arg3: memref<16x64xbf16, #tpu.memory_space<vmem>>, %arg4: memref<16x64xbf16, #tpu.memory_space<vmem>>, %arg5: memref<2x64xf32, #tpu.memory_space<vmem>>, %arg6: memref<2x64xf32, #tpu.memory_space<vmem>>) attributes {dimension_semantics = [#tpu.dimension_semantics<parallel>, #tpu.dimension_semantics<arbitrary>], iteration_bounds = array<i64: 1, 1>, scalar_prefetch = 0 : i64, scratch_operands = 1 : i64, tpu.core_type = #tpu.core_type<tc>, window_params = [{transform_indices = @transform_0, window_bounds = array<i64: 16, 16>}, {transform_indices = @transform_1, window_bounds = array<i64: 16, 64>}, {transform_indices = @transform_2, window_bounds = array<i64: 16, 64>}, {transform_indices = @transform_3, window_bounds = array<i64: 2, 64>}]} {
    %c0_i32 = arith.constant 0 : i32
    %0 = arith.cmpi eq, %arg1, %c0_i32 : i32
    %1 = arith.extui %0 : i1 to i32
    %c0_i32_0 = arith.constant 0 : i32
    %2 = arith.cmpi ne, %1, %c0_i32_0 : i32
    scf.if %2 {
      %cst_17 = arith.constant 0.000000e+00 : f32
      %22 = vector.broadcast %cst_17 : f32 to vector<2x64xf32>
      %c0_18 = arith.constant 0 : index
      %c0_19 = arith.constant 0 : index
      %23 = vector.load %arg6[%c0_18, %c0_19] : memref<2x64xf32, #tpu.memory_space<vmem>>, vector<2x64xf32>
      tpu.vector_store %arg6[%c0_18, %c0_19], %22 {strides = array<i32>} : memref<2x64xf32, #tpu.memory_space<vmem>>, vector<2x64xf32>,
    } else {
    }
    %c0 = arith.constant 0 : index
    %c0_1 = arith.constant 0 : index
    %3 = vector.load %arg2[%c0, %c0_1] : memref<16x16xbf16, #tpu.memory_space<vmem>>, vector<16x16xbf16>
    %c0_2 = arith.constant 0 : index
    %c0_3 = arith.constant 0 : index
    %4 = vector.load %arg3[%c0_2, %c0_3] : memref<16x64xbf16, #tpu.memory_space<vmem>>, vector<16x64xbf16>
    %cst = arith.constant dense<0.000000e+00> : vector<16x64xf32>
    %5 = tpu.matmul %3, %4, %cst {dimension_numbers = #tpu.dot_dimension_numbers<[1], [0], [0], [1], [0, 0, 1, 1], [], []>} : vector<16x16xbf16>, vector<16x64xbf16>, vector<16x64xf32> -> vector<16x64xf32>
    %6 = arith.truncf %5 : vector<16x64xf32> to vector<16x64xbf16>
    %c0_4 = arith.constant 0 : index
    %c0_5 = arith.constant 0 : index
    %7 = vector.load %arg4[%c0_4, %c0_5] : memref<16x64xbf16, #tpu.memory_space<vmem>>, vector<16x64xbf16>
    tpu.vector_store %arg4[%c0_4, %c0_5], %6 {strides = array<i32>} : memref<16x64xbf16, #tpu.memory_space<vmem>>, vector<16x64xbf16>,
    %c0_6 = arith.constant 0 : index
    %c0_7 = arith.constant 0 : index
    %8 = vector.load %arg6[%c0_6, %c0_7] : memref<2x64xf32, #tpu.memory_space<vmem>>, vector<1x64xf32>
    %cst_8 = arith.constant dense<0.000000e+00> : vector<64xf32>
    %9 = vector.multi_reduction <add>, %5, %cst_8 [0] : vector<16x64xf32> to vector<64xf32>
    %10 = vector.shape_cast %9 : vector<64xf32> to vector<1x64xf32>
    %11 = arith.addf %8, %10 : vector<1x64xf32>
    %c0_9 = arith.constant 0 : index
    %c0_10 = arith.constant 0 : index
    %12 = vector.load %arg6[%c0_9, %c0_10] : memref<2x64xf32, #tpu.memory_space<vmem>>, vector<1x64xf32>
    tpu.vector_store %arg6[%c0_9, %c0_10], %11 {strides = array<i32>} : memref<2x64xf32, #tpu.memory_space<vmem>>, vector<1x64xf32>,
    %c1 = arith.constant 1 : index
    %c0_11 = arith.constant 0 : index
    %13 = vector.load %arg6[%c1, %c0_11] : memref<2x64xf32, #tpu.memory_space<vmem>>, vector<1x64xf32>
    %14 = arith.mulf %5, %5 : vector<16x64xf32>
    %cst_12 = arith.constant dense<0.000000e+00> : vector<64xf32>
    %15 = vector.multi_reduction <add>, %14, %cst_12 [0] : vector<16x64xf32> to vector<64xf32>
    %16 = vector.shape_cast %15 : vector<64xf32> to vector<1x64xf32>
    %17 = arith.addf %13, %16 : vector<1x64xf32>
    %c1_13 = arith.constant 1 : index
    %c0_14 = arith.constant 0 : index
    %18 = vector.load %arg6[%c1_13, %c0_14] : memref<2x64xf32, #tpu.memory_space<vmem>>, vector<1x64xf32>
    tpu.vector_store %arg6[%c1_13, %c0_14], %17 {strides = array<i32>} : memref<2x64xf32, #tpu.memory_space<vmem>>, vector<1x64xf32>,
    %c0_i32_15 = arith.constant 0 : i32
    %19 = arith.cmpi eq, %arg1, %c0_i32_15 : i32
    %20 = arith.extui %19 : i1 to i32
    %c0_i32_16 = arith.constant 0 : i32
    %21 = arith.cmpi ne, %20, %c0_i32_16 : i32
    scf.if %21 {
      %c0_17 = arith.constant 0 : index
      %c0_18 = arith.constant 0 : index
      %22 = vector.load %arg6[%c0_17, %c0_18] : memref<2x64xf32, #tpu.memory_space<vmem>>, vector<2x64xf32>
      %c0_19 = arith.constant 0 : index
      %c0_20 = arith.constant 0 : index
      %23 = vector.load %arg5[%c0_19, %c0_20] : memref<2x64xf32, #tpu.memory_space<vmem>>, vector<2x64xf32>
      tpu.vector_store %arg5[%c0_19, %c0_20], %22 {strides = array<i32>} : memref<2x64xf32, #tpu.memory_space<vmem>>, vector<2x64xf32>,
    } else {
    }
    return
  }
  func.func @transform_0(%arg0: i32, %arg1: i32) -> (i32, i32) {
    %c0_i32 = arith.constant 0 : i32
    %c0_i32_0 = arith.constant 0 : i32
    return %arg1, %c0_i32 : i32, i32
  }
  func.func @transform_1(%arg0: i32, %arg1: i32) -> (i32, i32) {
    %c0_i32 = arith.constant 0 : i32
    %c0_i32_0 = arith.constant 0 : i32
    return %c0_i32, %arg0 : i32, i32
  }
  func.func @transform_2(%arg0: i32, %arg1: i32) -> (i32, i32) {
    %c0_i32 = arith.constant 0 : i32
    return %arg1, %arg0 : i32, i32
  }
  func.func @transform_3(%arg0: i32, %arg1: i32) -> (i32, i32) {
    %c0_i32 = arith.constant 0 : i32
    %c0_i32_0 = arith.constant 0 : i32
    return %c0_i32, %arg0 : i32, i32
  }
}

</mosaic_0001>

<bundles_post_ra>
// kernel: tpu_custom_call.1
= control target key start
LH: loop header
LB: loop body
LE: loop exit
PB: predicated region body
PF: predicated region fallthrough
CT: control target
= control target key end

     0   :  { %9 = vsyncpa [#allocation4], 0  ;;  %s401_s0 = inlined_call_operand.hbm [shape: bf16[16,16], index: 0, kind: input, shape index: {}]   ;;  %s402_s1 = inlined_call_operand.hbm [shape: bf16[16,64], index: 1, kind: input, shape index: {}]   ;;  %s403_s2 = inlined_call_operand.hbm [shape: bf16[16,64], index: 2, kind: output, shape index: {0}]   ;;  %s404_s3 = inlined_call_operand.hbm [shape: f32[2,64], index: 3, kind: output, shape index: {1}]  }
   0x1   :  { %10 = vsyncpa [#allocation7], 0 }
   0x2   :  { %11 = vsyncpa [#allocation5], 0 }
   0x3   :  { %12 = vsyncpa [#allocation10], 0  ;;  %s308_s12 = smov [#allocation3]   ;;  %s212_s16 = scalar_lea.hbm %s401_s0, 128 }
   0x4   :  { %s18_s13 = sshll.u32 %s308_s12, 4  ;;  %p213_p0 = scmp.ne.s32.totalorder %s401_s0, %s212_s16  ;;  %s19_s13 = int_to_ptr.vmem [resolvable:$true] %s18_s13 }
   0x5   :  { %p216_p1 = scmp.lt.u32.totalorder %s212_s16, %s401_s0 }
   0x7   :  { %p218_p2 = pnand %p216_p1, %p213_p0 }
   0x9   :  { %221 = shalt.err (!%p218_p2)
}
   0xa   :  { %s222_s21 = scalar_lea.vmem %s19_s13, 128  ;;  %p227_p4 = scmp.lt.s32.totalorder %s19_s13, %s19_s13 }
   0xb   :  { %p223_p3 = scmp.ne.s32.totalorder %s19_s13, %s222_s21  ;;  %p228_p5 = scmp.lt.s32.totalorder %s222_s21, %s222_s21 }
   0xd   :  { %p229_p6 = por %p228_p5, %p227_p4 }
   0xf   :  { %p230_p7 = pnand %p229_p6, %p223_p3 }
  0x11   :  { %233 = shalt.err (!%p230_p7)
}
  0x12   :  { %s309_s22 = smov 64   ;;  %s310_s23 = smov 4  }
  0x13   :  { %24 = dma.hbm_to_vmem [thread:$0]  %s401_s0, 128, %s19_s13, [#allocation4], %s309_s22, %s309_s22, %s310_s23  }
  0x14   :  { %s311_s26 = smov [#allocation6]   ;;  %s234_s30 = scalar_lea.hbm %s402_s1, 128 }
  0x15   :  { %s30_s27 = sshll.u32 %s311_s26, 4  ;;  %p235_p8 = scmp.ne.s32.totalorder %s402_s1, %s234_s30  ;;  %s31_s27 = int_to_ptr.vmem [resolvable:$true] %s30_s27 }
  0x16   :  { %p238_p9 = scmp.lt.u32.totalorder %s234_s30, %s402_s1 }
  0x18   :  { %p240_p10 = pnand %p238_p9, %p235_p8 }
  0x1a   :  { %243 = shalt.err (!%p240_p10)
}
  0x1b   :  { %s244_s8 = scalar_lea.vmem %s31_s27, 128  ;;  %p249_p12 = scmp.lt.s32.totalorder %s31_s27, %s31_s27 }
  0x1c   :  { %p245_p11 = scmp.ne.s32.totalorder %s31_s27, %s244_s8  ;;  %p250_p13 = scmp.lt.s32.totalorder %s244_s8, %s244_s8 }
  0x1e   :  { %p251_p0 = por %p250_p13, %p249_p12 }
  0x20   :  { %p252_p1 = pnand %p251_p0, %p245_p11 }
  0x22   :  { %255 = shalt.err (!%p252_p1)
}
  0x23   :  { %36 = dma.hbm_to_vmem [thread:$0]  %s402_s1, 128, %s31_s27, [#allocation7], %s309_s22, %s309_s22, %s310_s23  }
  0x24   :  { %300 = dma.done.wait [#allocation4], 128  }
  0x25   :  { %301 = vsyncadd [#allocation4], 4294967168 }
  0x26   :  { %302 = dma.done.wait [#allocation7], 128  }
  0x27   :  { %303 = vsyncadd [#allocation7], 4294967168  ;;  %vm48_vm0 = vcmask 517120   ;;  %v312_v0 = vmov 0.0   ;;  %vm313_vm1 = vmmov 0   ;;  %v210_v1 = vld [vmem:[#allocation6] sm:$0xff]  }
  0x28   :  { %49 = vst.msk [vmem:[#allocation2] sm:$0x3] %vm48_vm0, %v312_v0  ;;  %196 = vmatprep.subr.bf16.mxu0 %v312_v0  ;;  %198 = vmatprep.mubr.msk.bf16.mxu0 %vm313_vm1, %v312_v0  ;;  %v211_v2 = vld [vmem:[#allocation3] sm:$0xff]   ;;  %vm65_vm2 = vcmask 130048   ;;  %vm122_vm3 = vcmask 523264   ;;  %vm118_vm4 = vcmask 519168  }
  0x29   :  { %197 = vmatpush3.bf16.msra.mxu0 %v210_v1  ;;  %s314_s1 = smov [#allocation8]  }
  0x2a   :  { %s160_s10 = sshll.u32 %s314_s1, 4  ;;  %s161_s10 = int_to_ptr.vmem [resolvable:$true] %s160_s10 }
  0x2b   :  { %s256_s11 = scalar_lea.vmem %s161_s10, 128  ;;  %p261_p3 = scmp.lt.s32.totalorder %s161_s10, %s161_s10 }
  0x2c   :  { %199 = vmatmul.mubr.msk.bf16.vlgmr.msra.gmra.mrb[0].mxu0 %vm65_vm2, %v211_v2  ;;  %p257_p2 = scmp.ne.s32.totalorder %s161_s10, %s256_s11  ;;  %p262_p4 = scmp.lt.s32.totalorder %s256_s11, %s256_s11 }
  0x2e   :  { %p263_p5 = por %p262_p4, %p261_p3 }
  0x30   :  { %p264_p6 = pnand %p263_p5, %p257_p2 }
  0xff   :  { %v103_v3 = vpop.f32.mrb[0].mxu0 }
 0x100   :  { %v192_v4 = vpack.c.bf16 %v103_v3, %v103_v3  ;;  %v136_v5 = vmul.f32 %v103_v3, %v103_v3  ;;  %v200_v6 = vpop.f32.mrb[1].mxu0  ;;  %v123_v8 = vsel %vm122_vm3, %v103_v3, 0.0 }
 0x101   :  { %v106_v7 = vpop.f32.mrb[2].mxu0 }
 0x102   :  { %v193_v9 = vpack.c.bf16 %v106_v7, %v106_v7  ;;  %v124_v10 = vsel %vm122_vm3, %v106_v7, 0.0  ;;  %v137_v11 = vmul.f32 %v106_v7, %v106_v7  ;;  %v201_v12 = vpop.f32.mrb[3].mxu0  ;;  %119 = vst.msk [vmem:[#allocation8] sm:$0xf] %vm118_vm4, %v192_v4  ;;  %v138_v14 = vsel %vm122_vm3, %v136_v5, 0.0 }
 0x103   :  { %v125_v13 = vadd.f32 %v124_v10, %v123_v8 }
 0x104   :  { %v139_v15 = vsel %vm122_vm3, %v137_v11, 0.0  ;;  %120 = vst.msk [vmem:[#allocation8 + $0x4] sm:$0xf] %vm118_vm4, %v193_v9 }
 0x105   :  { %v126_v16 = vrot.slane %v125_v13, 4  ;;  %v140_v17 = vadd.f32 %v139_v15, %v138_v14 }
 0x106   :  { %267 = shalt.err (!%p264_p6)
}
 0x107   :  { %s268_s14 = scalar_lea.hbm %s403_s2, 128 }
 0x108   :  { %p269_p7 = scmp.ne.s32.totalorder %s403_s2, %s268_s14  ;;  %p272_p8 = scmp.lt.u32.totalorder %s268_s14, %s403_s2 }
 0x10a   :  { %p274_p9 = pnand %p272_p8, %p269_p7 }
 0x10c   :  { %277 = shalt.err (!%p274_p9)
}
 0x10d   :  { %166 = dma.vmem_to_hbm [thread:$0]  %s161_s10, 128, %s403_s2, [#allocation5], %s309_s22, %s309_s22, %s310_s23   ;;  %v127_v18 = vadd.f32 %v126_v16, %v125_v13  ;;  %v141_v19 = vrot.slane %v140_v17, 4  ;;  %v121_v26 = vld [vmem:[#allocation2] sm:$0x1]  ;;  %vm133_vm5 = vcmask 516096  }
 0x10e   :  { %v135_v29 = vld [vmem:[#allocation2 + $0x1] sm:$0x1]  ;;  %s315_s21 = smov [#allocation9]  }
 0x10f   :  { %v128_v20 = vrot.slane %v127_v18, 2  ;;  %v142_v21 = vadd.f32 %v141_v19, %v140_v17  ;;  %s173_s2 = sshll.u32 %s315_s21, 4  ;;  %s174_s2 = int_to_ptr.vmem [resolvable:$true] %s173_s2 }
 0x110   :  { %s278_s22 = scalar_lea.vmem %s174_s2, 32  ;;  %p283_p11 = scmp.lt.s32.totalorder %s174_s2, %s174_s2 }
 0x111   :  { %v129_v22 = vadd.f32 %v128_v20, %v127_v18  ;;  %v143_v23 = vrot.slane %v142_v21, 2  ;;  %p279_p10 = scmp.ne.s32.totalorder %s174_s2, %s278_s22  ;;  %p284_p12 = scmp.lt.s32.totalorder %s278_s22, %s278_s22 }
 0x113   :  { %v130_v24 = vrot.slane %v129_v22, 1  ;;  %v144_v25 = vadd.f32 %v143_v23, %v142_v21  ;;  %p285_p13 = por %p284_p12, %p283_p11 }
 0x115   :  { %v131_v27 = vadd.f32 %v130_v24, %v129_v22  ;;  %v145_v28 = vrot.slane %v144_v25, 1  ;;  %p286_p0 = pnand %p285_p13, %p279_p10 }
 0x117   :  { %v132_v30 = vadd.f32 %v131_v27, %v121_v26  ;;  %v146_v31 = vadd.f32 %v145_v28, %v144_v25 }
 0x119   :  { %134 = vst.msk [vmem:[#allocation2] sm:$0x1] %vm133_vm5, %v132_v30  ;;  %v147_v32 = vadd.f32 %v146_v31, %v135_v29 }
 0x11b   :  { %148 = vst.msk [vmem:[#allocation2 + $0x1] sm:$0x1] %vm133_vm5, %v147_v32 }
 0x122   :  { %v152_v33 = vld [vmem:[#allocation2] sm:$0x3] }
 0x123   :  { %154 = vst.msk [vmem:[#allocation9] sm:$0x3] %vm48_vm0, %v152_v33 }
 0x124   :  { %289 = shalt.err (!%p286_p0)
}
 0x125   :  { %s290_s25 = scalar_lea.hbm %s404_s3, 32 }
 0x126   :  { %p291_p1 = scmp.ne.s32.totalorder %s404_s3, %s290_s25  ;;  %p294_p2 = scmp.lt.u32.totalorder %s290_s25, %s404_s3 }
 0x128   :  { %p296_p3 = pnand %p294_p2, %p291_p1 }
 0x12a   :  { %299 = shalt.err (!%p296_p3)
}
 0x12b   :  { %176 = dma.vmem_to_hbm [thread:$0]  %s174_s2, 32, %s404_s3, [#allocation10]  }
 0x12c   :  { %304 = dma.done.wait [#allocation5], 128  }
 0x12d   :  { %305 = vsyncadd [#allocation5], 4294967168 }
 0x12e   :  { %306 = dma.done.wait [#allocation10], 32  }
 0x12f   :  { %307 = vsyncadd [#allocation10], 4294967264 }
 0x130   :  { %183 = vsyncpa [#allocation4], 1 }
 0x131   :  { %184 = vsyncpa [#allocation7], 1 }
 0x132   :  { %185 = vsyncpa [#allocation5], 1 }
 0x133   :  { %186 = vsyncpa [#allocation10], 1 }

</bundles_post_ra>
